<compile_context>
chip_gen: v5e
topology: v5e:2x2
jax: 0.10.0
libtpu: 0.0.40
codegen_flags: <defaults>
</compile_context>

<pallas_src>
import functools

import jax
import jax.numpy as jnp
from jax import lax
from jax.experimental import pallas as pl
from jax.experimental.pallas import tpu as pltpu


def _patch_merging_kernel(x_e_ref, x_o_ref, w_ref, gb_ref, o_ref, *, eps):
    """Fused 2x2-merge matmul + LayerNorm(c2) for one row-tile.

    x_e_ref : (tr, 1, Wo, 2*C1)  even image rows, lanes = [w-even C1 | w-odd C1]
    x_o_ref : (tr, 1, Wo, 2*C1)  odd  image rows, lanes = [w-even C1 | w-odd C1]
    w_ref   : (2, 2*C1, c2)      stacked [W_e, W_o] split weights
    gb_ref  : (2, c2)            stacked [gamma, beta]
    o_ref   : (tr*Wo, c2)
    """
    tr, _, wo, k = x_e_ref.shape
    # Collapse (tr, 1, Wo) into rows; trailing (lane) dim is unchanged.
    xe = x_e_ref[...].reshape(tr * wo, k)     # rows = merged patches: [x0 | x2]
    xo = x_o_ref[...].reshape(tr * wo, k)     # rows = merged patches: [x1 | x3]

    w_e = w_ref[0]                            # (2*C1, c2)
    w_o = w_ref[1]                            # (2*C1, c2)

    # MXU matmuls in the native input dtype, f32 accumulation.
    y = jnp.dot(xe, w_e, preferred_element_type=jnp.float32)
    y = y + jnp.dot(xo, w_o, preferred_element_type=jnp.float32)

    # LayerNorm over the last (c2) axis, f32 statistics (PyTorch eps=1e-5).
    mean = jnp.mean(y, axis=-1, keepdims=True)
    cen = y - mean
    var = jnp.mean(cen * cen, axis=-1, keepdims=True)
    y_hat = cen * lax.rsqrt(var + eps)

    gb = gb_ref[...].astype(jnp.float32)      # (2, c2)
    gamma = gb[0:1, :]
    beta = gb[1:2, :]
    o_ref[...] = (y_hat * gamma + beta).astype(o_ref.dtype)


def _fused_merge_reduce_norm(x4, w_eo, gb, *, eps):
    """x4: (B*Ho, 2, Wo, 2*C1) -> (B*Ho*Wo, c2) via one Pallas kernel."""
    rows_bh, _, wo, k = x4.shape
    c2 = w_eo.shape[-1]
    rows_out = rows_bh * wo
    itemsize = jnp.dtype(x4.dtype).itemsize

    # Row-tile selection: big tiles (HBM roofline), capped by a VMEM budget so
    # the double-buffered blocks fit the scoped-VMEM defaults on every gen.
    bytes_per_bh = (2 * wo * k + wo * c2) * itemsize        # both inputs + output
    vmem_budget = 8 * 1024 * 1024                           # per buffered working set
    tr_cap = max(1, vmem_budget // (2 * bytes_per_bh))      # x2 for double buffering
    tr_target = max(1, 2048 // max(wo, 1))                  # ~2048 patches per step
    tr = min(rows_bh, tr_target, tr_cap)
    if tr < rows_bh:
        tr = min(rows_bh, max(8, (tr // 8) * 8))            # keep sublane-aligned tiles
    grid = (pl.cdiv(rows_bh, tr),)

    kernel = functools.partial(_patch_merging_kernel, eps=eps)
    return pl.pallas_call(
        kernel,
        out_shape=jax.ShapeDtypeStruct((rows_out, c2), x4.dtype),
        grid_spec=pltpu.PrefetchScalarGridSpec(
            num_scalar_prefetch=0,
            grid=grid,
            in_specs=[
                # Even-h image rows of each merged row-block (parity index 0).
                pl.BlockSpec((tr, 1, wo, k), lambda i: (i, 0, 0, 0)),
                # Odd-h image rows (parity index 1) — same array, second view.
                pl.BlockSpec((tr, 1, wo, k), lambda i: (i, 1, 0, 0)),
                # Split reduction weights (grid-invariant, stays resident).
                pl.BlockSpec((2, k, c2), lambda i: (0, 0, 0)),
                # gamma/beta merged into one operand.
                pl.BlockSpec((2, c2), lambda i: (0, 0)),
            ],
            out_specs=pl.BlockSpec((tr * wo, c2), lambda i: (i, 0)),
        ),
        compiler_params=pltpu.CompilerParams(
            dimension_semantics=("parallel",),
        ),
    )(x4, x4, w_eo, gb)


def patch_merging_forward(x, w_red, gamma, beta, *, eps=1e-5):
    """PatchMerging forward. x: (B, C1, H, W) NCHW -> (B, 2*C1, ceil(H/2), ceil(W/2))."""
    B, C1, H, W = x.shape
    c2 = w_red.shape[1]
    assert w_red.shape[0] == 4 * C1 and c2 == 2 * C1

    # NCHW -> NHWC (module interface is NCHW; this layout pass stays in XLA).
    # TODO(synk): if the surrounding network is NHWC end-to-end, drop these permutes.
    xh = jnp.transpose(x, (0, 2, 3, 1))

    # Pad H/W to even (matches F.pad(x, (0, 0, 0, W % 2, 0, H % 2))).
    if (H % 2 == 1) or (W % 2 == 1):
        xh = jnp.pad(xh, ((0, 0), (0, H % 2), (0, W % 2), (0, 0)))
    Ho, Wo = xh.shape[1] // 2, xh.shape[2] // 2

    # Free (metadata-only) reshape: (B, 2*Ho, 2*Wo, C1) -> (B*Ho, 2, Wo, 2*C1).
    # dim1 = h-parity within a merged row block; last dim = [w-even C1 | w-odd C1].
    x4 = xh.reshape(B * Ho, 2, Wo, 2 * C1)

    # Split the (4*C1, c2) reduction weight so the concat never materializes:
    #   concat([x0,x1,x2,x3]) @ W == [x0|x2] @ W_e + [x1|x3] @ W_o
    w_e = jnp.concatenate([w_red[0:C1], w_red[2 * C1:3 * C1]], axis=0)
    w_o = jnp.concatenate([w_red[C1:2 * C1], w_red[3 * C1:4 * C1]], axis=0)
    w_eo = jnp.stack([w_e, w_o], axis=0)                    # (2, 2*C1, c2)
    gb = jnp.stack([gamma.astype(jnp.float32),
                    beta.astype(jnp.float32)], axis=0)      # (2, c2)

    # TODO(synk): only the default norm_first=False order (reduction then norm)
    # is implemented; norm_first=True (Swin v1) would normalize the 4*C1 vector
    # before the matmul and needs a different fusion.
    y = _fused_merge_reduce_norm(x4, w_eo, gb, eps=eps)     # (B*Ho*Wo, c2)

    # Back to NCHW.
    y = y.reshape(B, Ho, Wo, c2)
    return jnp.transpose(y, (0, 3, 1, 2))


def _reference_forward(x, w_red, gamma, beta, eps=1e-5):
    """Plain-JAX reference (concat formulation) for sanity checking."""
    B, C, H, W = x.shape
    xh = jnp.transpose(x, (0, 2, 3, 1))
    if (H % 2 == 1) or (W % 2 == 1):
        xh = jnp.pad(xh, ((0, 0), (0, H % 2), (0, W % 2), (0, 0)))
    Ho, Wo = xh.shape[1] // 2, xh.shape[2] // 2
    x0 = xh[:, 0::2, 0::2, :]
    x1 = xh[:, 1::2, 0::2, :]
    x2 = xh[:, 0::2, 1::2, :]
    x3 = xh[:, 1::2, 1::2, :]
    xm = jnp.concatenate([x0, x1, x2, x3], -1).reshape(B * Ho * Wo, 4 * C)
    y = xm.astype(jnp.float32) @ w_red.astype(jnp.float32)
    mean = jnp.mean(y, -1, keepdims=True)
    var = jnp.mean((y - mean) ** 2, -1, keepdims=True)
    y = (y - mean) * lax.rsqrt(var + eps) * gamma + beta
    return jnp.transpose(y.reshape(B, Ho, Wo, 2 * C), (0, 3, 1, 2))


if __name__ == "__main__":
    key = jax.random.PRNGKey(0)
    k_x, k_w, k_g, k_b = jax.random.split(key, 4)

    B, C1, H, W = 2, 4, 16, 16       # c1=4, c2=2*c1=8
    C2 = 2 * C1

    x = jax.random.normal(k_x, (B, C1, H, W), dtype=jnp.float32)
    # nn.Linear(4*c1, c2, bias=False): torch weight is (c2, 4*c1); kernel takes (4*c1, c2).
    w_red = jax.random.normal(k_w, (4 * C1, C2), dtype=jnp.float32) * 0.1
    gamma = 1.0 + 0.05 * jax.random.normal(k_g, (C2,), dtype=jnp.float32)
    beta = 0.05 * jax.random.normal(k_b, (C2,), dtype=jnp.float32)

    out = patch_merging_forward(x, w_red, gamma, beta)
    out = jax.block_until_ready(out)

    ref = _reference_forward(x, w_red, gamma, beta)
    assert out.shape == (B, C2, H // 2, W // 2), out.shape
    assert jnp.allclose(out, ref, atol=1e-4, rtol=1e-4), float(jnp.max(jnp.abs(out - ref)))

    print("KERNEL_OK")
</pallas_src>

<mosaic_0001>
module attributes {stable_mosaic.version = 11 : i64} {
  func.func @_patch_merging_kernel(%arg0: i32, %arg1: memref<16x1x8x8xf32, #tpu.memory_space<vmem>>, %arg2: memref<16x1x8x8xf32, #tpu.memory_space<vmem>>, %arg3: memref<2x8x8xf32, #tpu.memory_space<vmem>>, %arg4: memref<2x8xf32, #tpu.memory_space<vmem>>, %arg5: memref<128x8xf32, #tpu.memory_space<vmem>>) attributes {dimension_semantics = [#tpu.dimension_semantics<parallel>], iteration_bounds = array<i64: 1>, scalar_prefetch = 0 : i64, scratch_operands = 0 : i64, tpu.core_type = #tpu.core_type<tc>, window_params = [{transform_indices = @transform_0, window_bounds = array<i64: 16, 1, 8, 8>}, {transform_indices = @transform_1, window_bounds = array<i64: 16, 1, 8, 8>}, {pipeline_mode = #tpu.pipeline_mode<synchronous>, transform_indices = @transform_2, window_bounds = array<i64: 2, 8, 8>}, {pipeline_mode = #tpu.pipeline_mode<synchronous>, transform_indices = @transform_3, window_bounds = array<i64: 2, 8>}, {transform_indices = @transform_4, window_bounds = array<i64: 128, 8>}]} {
    %c0 = arith.constant 0 : index
    %c0_0 = arith.constant 0 : index
    %c0_1 = arith.constant 0 : index
    %c0_2 = arith.constant 0 : index
    %0 = vector.load %arg1[%c0, %c0_0, %c0_1, %c0_2] : memref<16x1x8x8xf32, #tpu.memory_space<vmem>>, vector<16x1x8x8xf32>
    %1 = vector.shape_cast %0 : vector<16x1x8x8xf32> to vector<128x8xf32>
    %c0_3 = arith.constant 0 : index
    %c0_4 = arith.constant 0 : index
    %c0_5 = arith.constant 0 : index
    %c0_6 = arith.constant 0 : index
    %2 = vector.load %arg2[%c0_3, %c0_4, %c0_5, %c0_6] : memref<16x1x8x8xf32, #tpu.memory_space<vmem>>, vector<16x1x8x8xf32>
    %3 = vector.shape_cast %2 : vector<16x1x8x8xf32> to vector<128x8xf32>
    %c0_7 = arith.constant 0 : index
    %c0_8 = arith.constant 0 : index
    %c0_9 = arith.constant 0 : index
    %4 = vector.load %arg3[%c0_7, %c0_8, %c0_9] : memref<2x8x8xf32, #tpu.memory_space<vmem>>, vector<1x8x8xf32>
    %5 = vector.shape_cast %4 : vector<1x8x8xf32> to vector<8x8xf32>
    %c1 = arith.constant 1 : index
    %c0_10 = arith.constant 0 : index
    %c0_11 = arith.constant 0 : index
    %6 = vector.load %arg3[%c1, %c0_10, %c0_11] : memref<2x8x8xf32, #tpu.memory_space<vmem>>, vector<1x8x8xf32>
    %7 = vector.shape_cast %6 : vector<1x8x8xf32> to vector<8x8xf32>
    %cst = arith.constant dense<0.000000e+00> : vector<128x8xf32>
    %8 = tpu.matmul %1, %5, %cst {dimension_numbers = #tpu.dot_dimension_numbers<[1], [0], [0], [1], [0, 0, 1, 1], [], []>} : vector<128x8xf32>, vector<8x8xf32>, vector<128x8xf32> -> vector<128x8xf32>
    %cst_12 = arith.constant dense<0.000000e+00> : vector<128x8xf32>
    %9 = tpu.matmul %3, %7, %cst_12 {dimension_numbers = #tpu.dot_dimension_numbers<[1], [0], [0], [1], [0, 0, 1, 1], [], []>} : vector<128x8xf32>, vector<8x8xf32>, vector<128x8xf32> -> vector<128x8xf32>
    %10 = arith.addf %8, %9 : vector<128x8xf32>
    %cst_13 = arith.constant dense<0.000000e+00> : vector<128xf32>
    %11 = vector.multi_reduction <add>, %10, %cst_13 [1] : vector<128x8xf32> to vector<128xf32>
    %12 = vector.shape_cast %11 : vector<128xf32> to vector<128x1xf32>
    %cst_14 = arith.constant 8.000000e+00 : f32
    %13 = vector.broadcast %cst_14 : f32 to vector<128x1xf32>
    %14 = arith.divf %12, %13 : vector<128x1xf32>
    %15 = vector.broadcast %14 : vector<128x1xf32> to vector<128x8xf32>
    %16 = arith.subf %10, %15 : vector<128x8xf32>
    %17 = arith.mulf %16, %16 : vector<128x8xf32>
    %cst_15 = arith.constant dense<0.000000e+00> : vector<128xf32>
    %18 = vector.multi_reduction <add>, %17, %cst_15 [1] : vector<128x8xf32> to vector<128xf32>
    %19 = vector.shape_cast %18 : vector<128xf32> to vector<128x1xf32>
    %cst_16 = arith.constant 8.000000e+00 : f32
    %20 = vector.broadcast %cst_16 : f32 to vector<128x1xf32>
    %21 = arith.divf %19, %20 : vector<128x1xf32>
    %cst_17 = arith.constant 9.99999974E-6 : f32
    %22 = vector.broadcast %cst_17 : f32 to vector<128x1xf32>
    %23 = arith.addf %21, %22 : vector<128x1xf32>
    %24 = math.rsqrt %23 : vector<128x1xf32>
    %25 = vector.broadcast %24 : vector<128x1xf32> to vector<128x8xf32>
    %26 = arith.mulf %16, %25 : vector<128x8xf32>
    %c0_18 = arith.constant 0 : index
    %c0_19 = arith.constant 0 : index
    %27 = vector.load %arg4[%c0_18, %c0_19] : memref<2x8xf32, #tpu.memory_space<vmem>>, vector<2x8xf32>
    %28 = vector.extract_strided_slice %27 {offsets = [0, 0], sizes = [1, 8], strides = [1, 1]} : vector<2x8xf32> to vector<1x8xf32>
    %29 = vector.extract_strided_slice %27 {offsets = [1, 0], sizes = [1, 8], strides = [1, 1]} : vector<2x8xf32> to vector<1x8xf32>
    %30 = vector.broadcast %28 : vector<1x8xf32> to vector<128x8xf32>
    %31 = arith.mulf %26, %30 : vector<128x8xf32>
    %32 = vector.broadcast %29 : vector<1x8xf32> to vector<128x8xf32>
    %33 = arith.addf %31, %32 : vector<128x8xf32>
    %c0_20 = arith.constant 0 : index
    %c0_21 = arith.constant 0 : index
    %34 = vector.load %arg5[%c0_20, %c0_21] : memref<128x8xf32, #tpu.memory_space<vmem>>, vector<128x8xf32>
    tpu.vector_store %arg5[%c0_20, %c0_21], %33 {strides = array<i32>} : memref<128x8xf32, #tpu.memory_space<vmem>>, vector<128x8xf32>,
    return
  }
  func.func @transform_0(%arg0: i32) -> (i32, i32, i32, i32) {
    %c0_i32 = arith.constant 0 : i32
    %c0_i32_0 = arith.constant 0 : i32
    %c0_i32_1 = arith.constant 0 : i32
    %c0_i32_2 = arith.constant 0 : i32
    return %arg0, %c0_i32, %c0_i32_0, %c0_i32_1 : i32, i32, i32, i32
  }
  func.func @transform_1(%arg0: i32) -> (i32, i32, i32, i32) {
    %c1_i32 = arith.constant 1 : i32
    %c0_i32 = arith.constant 0 : i32
    %c0_i32_0 = arith.constant 0 : i32
    %c0_i32_1 = arith.constant 0 : i32
    return %arg0, %c1_i32, %c0_i32, %c0_i32_0 : i32, i32, i32, i32
  }
  func.func @transform_2(%arg0: i32) -> (i32, i32, i32) {
    %c0_i32 = arith.constant 0 : i32
    %c0_i32_0 = arith.constant 0 : i32
    %c0_i32_1 = arith.constant 0 : i32
    %c0_i32_2 = arith.constant 0 : i32
    return %c0_i32, %c0_i32_0, %c0_i32_1 : i32, i32, i32
  }
  func.func @transform_3(%arg0: i32) -> (i32, i32) {
    %c0_i32 = arith.constant 0 : i32
    %c0_i32_0 = arith.constant 0 : i32
    %c0_i32_1 = arith.constant 0 : i32
    return %c0_i32, %c0_i32_0 : i32, i32
  }
  func.func @transform_4(%arg0: i32) -> (i32, i32) {
    %c0_i32 = arith.constant 0 : i32
    %c0_i32_0 = arith.constant 0 : i32
    return %arg0, %c0_i32 : i32, i32
  }
}

</mosaic_0001>

<bundles_post_ra>
// kernel: tpu_custom_call.1
= control target key start
LH: loop header
LB: loop body
LE: loop exit
PB: predicated region body
PF: predicated region fallthrough
CT: control target
= control target key end

     0   :  { %vm243_vm0 = vcmask 64512   ;;  %s1518_s0 = inlined_call_operand.vmem [shape: f32[16,2,8,8], index: 0, kind: input, shape index: {}]   ;;  %s1519_s1 = inlined_call_operand.vmem [shape: f32[16,2,8,8], index: 1, kind: input, shape index: {}]   ;;  %s1520_s2 = inlined_call_operand.vmem [shape: f32[2,8,8], index: 2, kind: input, shape index: {}]   ;;  %s1521_s3 = inlined_call_operand.vmem [shape: f32[2,8], index: 3, kind: input, shape index: {}]   ;;  %s1522_s4 = inlined_call_operand.vmem [shape: f32[128,8], index: 4, kind: output, shape index: {}]  }
   0x1   :  { %v908_v0 = vld [vmem:[%s1520_s2 + $0x8] sm:$0xff]  ;;  %v240_v1 = vld [vmem:[%s1520_s2] sm:$0xff]  ;;  %v893_v6 = vld [vmem:[%s1519_s1 + $0x18] sm:$0xff] }
   0x2   :  { %v892_v2 = vld [vmem:[%s1519_s1 + $0x8] sm:$0xff]  ;;  %307 = vmatpush.msra.mxu0 %v908_v0  ;;  %941 = vmatpush.msra.mxu2 %v908_v0  ;;  %v69_v4 = vld [vmem:[%s1518_s0] sm:$0xff]  ;;  %v901_v7 = vld [vmem:[%s1519_s1 + $0x98] sm:$0xff] }
   0x3   :  { %v900_v3 = vld [vmem:[%s1519_s1 + $0x88] sm:$0xff]  ;;  %v85_v5 = vld [vmem:[%s1518_s0 + $0x80] sm:$0xff]  ;;  %420 = vmatpush.msra.mxu1 %v240_v1  ;;  %942 = vmatpush.msra.mxu3 %v240_v1  ;;  %v71_v8 = vld [vmem:[%s1518_s0 + $0x10] sm:$0xff] }
   0x4   :  { %909 = vmatmul.msk.f32.vlgmr.msra.gmra.mxu0 %vm243_vm0, %v892_v2  ;;  %917 = vmatmul.msk.f32.vlgmr.msra.gmra.mxu2 %vm243_vm0, %v900_v3  ;;  %v87_v9 = vld [vmem:[%s1518_s0 + $0x90] sm:$0xff]  ;;  %v894_v10 = vld [vmem:[%s1519_s1 + $0x28] sm:$0xff]  ;;  %v73_v12 = vld [vmem:[%s1518_s0 + $0x20] sm:$0xff] }
   0x5   :  { %925 = vmatmul.msk.f32.vlgmr.msra.gmra.mxu1 %vm243_vm0, %v69_v4  ;;  %933 = vmatmul.msk.f32.vlgmr.msra.gmra.mxu3 %vm243_vm0, %v85_v5  ;;  %v902_v11 = vld [vmem:[%s1519_s1 + $0xa8] sm:$0xff]  ;;  %v89_v13 = vld [vmem:[%s1518_s0 + $0xa0] sm:$0xff]  ;;  %v895_v14 = vld [vmem:[%s1519_s1 + $0x38] sm:$0xff] }
   0x6   :  { %v903_v15 = vld [vmem:[%s1519_s1 + $0xb8] sm:$0xff]  ;;  %v75_v16 = vld [vmem:[%s1518_s0 + $0x30] sm:$0xff]  ;;  %v896_v18 = vld [vmem:[%s1519_s1 + $0x48] sm:$0xff] }
   0x7   :  { %v91_v17 = vld [vmem:[%s1518_s0 + $0xb0] sm:$0xff]  ;;  %v904_v19 = vld [vmem:[%s1519_s1 + $0xc8] sm:$0xff]  ;;  %v77_v20 = vld [vmem:[%s1518_s0 + $0x40] sm:$0xff] }
   0x8   :  { %v93_v21 = vld [vmem:[%s1518_s0 + $0xc0] sm:$0xff]  ;;  %v897_v22 = vld [vmem:[%s1519_s1 + $0x58] sm:$0xff]  ;;  %v79_v24 = vld [vmem:[%s1518_s0 + $0x50] sm:$0xff] }
   0x9   :  { %v905_v23 = vld [vmem:[%s1519_s1 + $0xd8] sm:$0xff]  ;;  %v95_v25 = vld [vmem:[%s1518_s0 + $0xd0] sm:$0xff]  ;;  %v898_v26 = vld [vmem:[%s1519_s1 + $0x68] sm:$0xff] }
   0xa   :  { %v906_v27 = vld [vmem:[%s1519_s1 + $0xe8] sm:$0xff]  ;;  %v81_v28 = vld [vmem:[%s1518_s0 + $0x60] sm:$0xff]  ;;  %v899_v30 = vld [vmem:[%s1519_s1 + $0x78] sm:$0xff] }
   0xb   :  { %v97_v29 = vld [vmem:[%s1518_s0 + $0xe0] sm:$0xff]  ;;  %v907_v31 = vld [vmem:[%s1519_s1 + $0xf8] sm:$0xff]  ;;  %v83_v32 = vld [vmem:[%s1518_s0 + $0x70] sm:$0xff] }
   0xc   :  { %910 = vmatmul.msk.f32.gmra.mxu0 %vm243_vm0, %v893_v6  ;;  %918 = vmatmul.msk.f32.gmra.mxu2 %vm243_vm0, %v901_v7  ;;  %v99_v33 = vld [vmem:[%s1518_s0 + $0xf0] sm:$0xff] }
   0xd   :  { %926 = vmatmul.msk.f32.gmra.mxu1 %vm243_vm0, %v71_v8  ;;  %934 = vmatmul.msk.f32.gmra.mxu3 %vm243_vm0, %v87_v9 }
  0x14   :  { %911 = vmatmul.msk.f32.gmra.mxu0 %vm243_vm0, %v894_v10  ;;  %919 = vmatmul.msk.f32.gmra.mxu2 %vm243_vm0, %v902_v11 }
  0x15   :  { %927 = vmatmul.msk.f32.gmra.mxu1 %vm243_vm0, %v73_v12  ;;  %935 = vmatmul.msk.f32.gmra.mxu3 %vm243_vm0, %v89_v13 }
  0x1c   :  { %912 = vmatmul.msk.f32.gmra.mxu0 %vm243_vm0, %v895_v14  ;;  %920 = vmatmul.msk.f32.gmra.mxu2 %vm243_vm0, %v903_v15 }
  0x1d   :  { %928 = vmatmul.msk.f32.gmra.mxu1 %vm243_vm0, %v75_v16  ;;  %936 = vmatmul.msk.f32.gmra.mxu3 %vm243_vm0, %v91_v17 }
  0x24   :  { %913 = vmatmul.msk.f32.gmra.mxu0 %vm243_vm0, %v896_v18  ;;  %921 = vmatmul.msk.f32.gmra.mxu2 %vm243_vm0, %v904_v19 }
  0x25   :  { %929 = vmatmul.msk.f32.gmra.mxu1 %vm243_vm0, %v77_v20  ;;  %937 = vmatmul.msk.f32.gmra.mxu3 %vm243_vm0, %v93_v21 }
  0x2c   :  { %914 = vmatmul.msk.f32.gmra.mxu0 %vm243_vm0, %v897_v22  ;;  %922 = vmatmul.msk.f32.gmra.mxu2 %vm243_vm0, %v905_v23 }
  0x2d   :  { %930 = vmatmul.msk.f32.gmra.mxu1 %vm243_vm0, %v79_v24  ;;  %938 = vmatmul.msk.f32.gmra.mxu3 %vm243_vm0, %v95_v25 }
  0x34   :  { %915 = vmatmul.msk.f32.gmra.mxu0 %vm243_vm0, %v898_v26  ;;  %923 = vmatmul.msk.f32.gmra.mxu2 %vm243_vm0, %v906_v27 }
  0x35   :  { %931 = vmatmul.msk.f32.gmra.mxu1 %vm243_vm0, %v81_v28  ;;  %939 = vmatmul.msk.f32.gmra.mxu3 %vm243_vm0, %v97_v29 }
  0x3c   :  { %916 = vmatmul.msk.f32.gmra.mxu0 %vm243_vm0, %v899_v30  ;;  %924 = vmatmul.msk.f32.gmra.mxu2 %vm243_vm0, %v907_v31 }
  0x3d   :  { %932 = vmatmul.msk.f32.gmra.mxu1 %vm243_vm0, %v83_v32  ;;  %940 = vmatmul.msk.f32.gmra.mxu3 %vm243_vm0, %v99_v33 }
  0x81   :  { %v309_v34 = vpop.f32.mrf.mxu0 }
  0x82   :  { %v422_v35 = vpop.f32.mrf.mxu1 }
  0x83   :  { %v1138_v36 = vadd.f32 %v422_v35, %v309_v34  ;;  %v978_v34 = vmov 8.0  }
  0x84   :  { %944 = vrcp.f32 %v978_v34 }
  0x85   :  { %v470_v37 = vsel %vm243_vm0, %v1138_v36, 0.0 }
  0x86   :  { %471 = vadd.xlane.f32.xlu0 %v470_v37 }
  0x87   :  { %v333_v38 = vpop.f32.mrf.mxu2 }
  0x88   :  { %v446_v39 = vpop.f32.mrf.mxu3 }
  0x89   :  { %v1142_v40 = vadd.f32 %v446_v39, %v333_v38  ;;  %v312_v41 = vpop.f32.mrf.mxu0 }
  0x8a   :  { %v425_v42 = vpop.f32.mrf.mxu1  ;;  %v945_v35 = vpop.eup %944 }
  0x8b   :  { %v1144_v43 = vadd.f32 %v425_v42, %v312_v41  ;;  %v494_v44 = vsel %vm243_vm0, %v1142_v40, 0.0  ;;  %v519_v37 = vmul.f32 8.0, %v945_v35  ;;  %vm523_vm1 = vweird.f32 %v945_v35 }
  0x8c   :  { %495 = vadd.xlane.f32.xlu2 %v494_v44 }
  0x8d   :  { %v473_v45 = vsel %vm243_vm0, %v1144_v43, 0.0  ;;  %v520_v38 = vsub.f32 1.0, %v519_v37 }
  0x8e   :  { %474 = vadd.xlane.f32.xlu0 %v473_v45 }
  0x8f   :  { %v336_v46 = vpop.f32.mrf.mxu2  ;;  %v521_v39 = vmul.f32 %v945_v35, %v520_v38 }
  0x90   :  { %v449_v47 = vpop.f32.mrf.mxu3 }
  0x91   :  { %v1150_v48 = vadd.f32 %v449_v47, %v336_v46  ;;  %v315_v49 = vpop.f32.mrf.mxu0  ;;  %v522_v41 = vadd.f32 %v945_v35, %v521_v39 }
  0x92   :  { %v428_v50 = vpop.f32.mrf.mxu1 }
  0x93   :  { %v1152_v51 = vadd.f32 %v428_v50, %v315_v49  ;;  %v497_v52 = vsel %vm243_vm0, %v1150_v48, 0.0  ;;  %v1202_v42 = vsel %vm523_vm1, %v945_v35, %v522_v41 }
  0x95   :  { %v476_v53 = vsel %vm243_vm0, %v1152_v51, 0.0 }
  0x96   :  { %477 = vadd.xlane.f32.xlu1 %v476_v53  ;;  %498 = vadd.xlane.f32.xlu0 %v497_v52 }
  0x97   :  { %v339_v54 = vpop.f32.mrf.mxu2 }
  0x98   :  { %v452_v55 = vpop.f32.mrf.mxu3 }
  0x99   :  { %v1158_v56 = vadd.f32 %v452_v55, %v339_v54  ;;  %v318_v57 = vpop.f32.mrf.mxu0 }
  0x9a   :  { %v431_v58 = vpop.f32.mrf.mxu1 }
  0x9b   :  { %v500_v59 = vsel %vm243_vm0, %v1158_v56, 0.0  ;;  %v1162_v62 = vadd.f32 %v431_v58, %v318_v57 }
  0x9d   :  { %v479_v3 = vsel %vm243_vm0, %v1162_v62, 0.0 }
  0x9e   :  { %501 = vadd.xlane.f32.xlu1 %v500_v59 }
  0x9f   :  { %v342_v60 = vpop.f32.mrf.mxu2 }
  0xa0   :  { %v455_v61 = vpop.f32.mrf.mxu3 }
  0xa1   :  { %v1164_v63 = vadd.f32 %v455_v61, %v342_v60  ;;  %v321_v0 = vpop.f32.mrf.mxu0 }
  0xa2   :  { %v434_v1 = vpop.f32.mrf.mxu1 }
  0xa3   :  { %v503_v2 = vsel %vm243_vm0, %v1164_v63, 0.0  ;;  %v1170_v4 = vadd.f32 %v434_v1, %v321_v0 }
  0xa4   :  { %504 = vadd.xlane.f32.xlu2 %v503_v2 }
  0xa5   :  { %v482_v10 = vsel %vm243_vm0, %v1170_v4, 0.0 }
  0xa6   :  { %480 = vadd.xlane.f32.xlu1 %v479_v3 }
  0xa7   :  { %v345_v5 = vpop.f32.mrf.mxu2 }
  0xa8   :  { %v458_v6 = vpop.f32.mrf.mxu3 }
  0xa9   :  { %v1172_v7 = vadd.f32 %v458_v6, %v345_v5  ;;  %v324_v8 = vpop.f32.mrf.mxu0 }
  0xaa   :  { %v437_v9 = vpop.f32.mrf.mxu1 }
  0xab   :  { %v506_v11 = vsel %vm243_vm0, %v1172_v7, 0.0  ;;  %v1178_v12 = vadd.f32 %v437_v9, %v324_v8 }
  0xac   :  { %483 = vadd.xlane.f32.xlu2 %v482_v10  ;;  %507 = vadd.xlane.f32.xlu0 %v506_v11 }
  0xad   :  { %v485_v19 = vsel %vm243_vm0, %v1178_v12, 0.0 }
  0xaf   :  { %v348_v13 = vpop.f32.mrf.mxu2 }
  0xb0   :  { %v461_v14 = vpop.f32.mrf.mxu3 }
  0xb1   :  { %v1180_v15 = vadd.f32 %v461_v14, %v348_v13  ;;  %v327_v16 = vpop.f32.mrf.mxu0 }
  0xb2   :  { %v440_v17 = vpop.f32.mrf.mxu1 }
  0xb3   :  { %v1182_v18 = vadd.f32 %v440_v17, %v327_v16  ;;  %v509_v20 = vsel %vm243_vm0, %v1180_v15, 0.0 }
  0xb4   :  { %486 = vadd.xlane.f32.xlu2 %v485_v19  ;;  %510 = vadd.xlane.f32.xlu1 %v509_v20 }
  0xb5   :  { %v488_v21 = vsel %vm243_vm0, %v1182_v18, 0.0 }
  0xb6   :  { %489 = vadd.xlane.f32.xlu0 %v488_v21 }
  0xb7   :  { %v351_v22 = vpop.f32.mrf.mxu2 }
  0xb8   :  { %v464_v23 = vpop.f32.mrf.mxu3 }
  0xb9   :  { %v1190_v24 = vadd.f32 %v464_v23, %v351_v22  ;;  %v330_v25 = vpop.f32.mrf.mxu0 }
  0xba   :  { %v443_v26 = vpop.f32.mrf.mxu1 }
  0xbb   :  { %v1192_v27 = vadd.f32 %v443_v26, %v330_v25  ;;  %v512_v28 = vsel %vm243_vm0, %v1190_v24, 0.0 }
  0xbc   :  { %513 = vadd.xlane.f32.xlu2 %v512_v28 }
  0xbd   :  { %v491_v29 = vsel %vm243_vm0, %v1192_v27, 0.0 }
  0xbe   :  { %492 = vadd.xlane.f32.xlu1 %v491_v29 }
  0xbf   :  { %v354_v30 = vpop.f32.mrf.mxu2 }
  0xc0   :  { %v467_v31 = vpop.f32.mrf.mxu3 }
  0xc1   :  { %v1198_v32 = vadd.f32 %v467_v31, %v354_v30 }
  0xc3   :  { %v515_v33 = vsel %vm243_vm0, %v1198_v32, 0.0 }
  0xc4   :  { %516 = vadd.xlane.f32.xlu0 %v515_v33 }
  0xf9   :  { %v472_v44 = vpop.xlane.xlu0 %471 }
  0xfa   :  { %v525_v45 = vmul.f32 %v1202_v42, %v472_v44 }
  0xfc   :  { %v1206_v46 = vsub.f32 %v1138_v36, %v525_v45 }
  0xfe   :  { %v557_v47 = vmul.f32 %v1206_v46, %v1206_v46 }
  0xff   :  { %v496_v49 = vpop.xlane.xlu2 %495 }
 0x100   :  { %v533_v50 = vmul.f32 %v1202_v42, %v496_v49  ;;  %v573_v52 = vsel %vm243_vm0, %v557_v47, 0.0 }
 0x101   :  { %574 = vadd.xlane.f32.xlu1 %v573_v52  ;;  %v475_v53 = vpop.xlane.xlu0 %474 }
 0x102   :  { %v1213_v54 = vsub.f32 %v1142_v40, %v533_v50  ;;  %v526_v55 = vmul.f32 %v1202_v42, %v475_v53 }
 0x104   :  { %v1217_v57 = vsub.f32 %v1144_v43, %v526_v55  ;;  %v565_v36 = vmul.f32 %v1213_v54, %v1213_v54 }
 0x106   :  { %v597_v58 = vsel %vm243_vm0, %v565_v36, 0.0  ;;  %v558_v59 = vmul.f32 %v1217_v57, %v1217_v57 }
 0x107   :  { %598 = vadd.xlane.f32.xlu0 %v597_v58 }
 0x108   :  { %v576_v60 = vsel %vm243_vm0, %v558_v59, 0.0 }
 0x109   :  { %v478_v61 = vpop.xlane.xlu1 %477  ;;  %577 = vadd.xlane.f32.xlu2 %v576_v60  ;;  %v499_v40 = vpop.xlane.xlu0 %498 }
 0x10a   :  { %v527_v0 = vmul.f32 %v1202_v42, %v478_v61  ;;  %v534_v1 = vmul.f32 %v1202_v42, %v499_v40 }
 0x10c   :  { %v1228_v43 = vsub.f32 %v1152_v51, %v527_v0  ;;  %v1231_v2 = vsub.f32 %v1150_v48, %v534_v1 }
 0x10e   :  { %v559_v3 = vmul.f32 %v1228_v43, %v1228_v43  ;;  %v566_v5 = vmul.f32 %v1231_v2, %v1231_v2 }
 0x110   :  { %v579_v6 = vsel %vm243_vm0, %v559_v3, 0.0  ;;  %v600_v8 = vsel %vm243_vm0, %v566_v5, 0.0 }
 0x111   :  { %v502_v9 = vpop.xlane.xlu1 %501  ;;  %580 = vadd.xlane.f32.xlu0 %v579_v6  ;;  %601 = vadd.xlane.f32.xlu1 %v600_v8 }
 0x112   :  { %v535_v10 = vmul.f32 %v1202_v42, %v502_v9 }
 0x114   :  { %v1241_v51 = vsub.f32 %v1158_v56, %v535_v10 }
 0x116   :  { %v567_v48 = vmul.f32 %v1241_v51, %v1241_v51 }
 0x117   :  { %v505_v11 = vpop.xlane.xlu2 %504 }
 0x118   :  { %v536_v13 = vmul.f32 %v1202_v42, %v505_v11  ;;  %v603_v14 = vsel %vm243_vm0, %v567_v48, 0.0 }
 0x119   :  { %v481_v16 = vpop.xlane.xlu1 %480  ;;  %604 = vadd.xlane.f32.xlu2 %v603_v14 }
 0x11a   :  { %v1248_v17 = vsub.f32 %v1164_v63, %v536_v13  ;;  %v528_v19 = vmul.f32 %v1202_v42, %v481_v16 }
 0x11c   :  { %v1252_v20 = vsub.f32 %v1162_v62, %v528_v19  ;;  %v568_v56 = vmul.f32 %v1248_v17, %v1248_v17 }
 0x11e   :  { %v606_v21 = vsel %vm243_vm0, %v568_v56, 0.0  ;;  %v560_v22 = vmul.f32 %v1252_v20, %v1252_v20 }
 0x11f   :  { %v484_v23 = vpop.xlane.xlu2 %483  ;;  %607 = vadd.xlane.f32.xlu0 %v606_v21  ;;  %v508_v25 = vpop.xlane.xlu0 %507 }
 0x120   :  { %v529_v26 = vmul.f32 %v1202_v42, %v484_v23  ;;  %v537_v63 = vmul.f32 %v1202_v42, %v508_v25  ;;  %v582_v28 = vsel %vm243_vm0, %v560_v22, 0.0 }
 0x121   :  { %583 = vadd.xlane.f32.xlu1 %v582_v28  ;;  %v829_v28 = vld [vmem:[%s1521_s3] sm:$0x3] }
 0x122   :  { %v1263_v62 = vsub.f32 %v1170_v4, %v529_v26  ;;  %v1266_v29 = vsub.f32 %v1172_v7, %v537_v63 }
 0x124   :  { %v561_v30 = vmul.f32 %v1263_v62, %v1263_v62  ;;  %v569_v31 = vmul.f32 %v1266_v29, %v1266_v29 }
 0x126   :  { %v585_v33 = vsel %vm243_vm0, %v561_v30, 0.0  ;;  %v609_v37 = vsel %vm243_vm0, %v569_v31, 0.0 }
 0x127   :  { %v487_v34 = vpop.xlane.xlu2 %486  ;;  %586 = vadd.xlane.f32.xlu2 %v585_v33  ;;  %v511_v38 = vpop.xlane.xlu1 %510 }
 0x128   :  { %v530_v35 = vmul.f32 %v1202_v42, %v487_v34  ;;  %v538_v55 = vmul.f32 %v1202_v42, %v511_v38 }
 0x129   :  { %610 = vadd.xlane.f32.xlu1 %v609_v37  ;;  %v490_v4 = vpop.xlane.xlu0 %489 }
 0x12a   :  { %v1276_v7 = vsub.f32 %v1178_v12, %v530_v35  ;;  %v531_v39 = vmul.f32 %v1202_v42, %v490_v4 }
 0x12c   :  { %v1280_v41 = vsub.f32 %v1182_v18, %v531_v39  ;;  %v562_v44 = vmul.f32 %v1276_v7, %v1276_v7  ;;  %v1328_v39 = vperm.slane %v829_v28, 0 }
 0x12e   :  { %v588_v45 = vsel %vm243_vm0, %v562_v44, 0.0  ;;  %v563_v47 = vmul.f32 %v1280_v41, %v1280_v41 }
 0x12f   :  { %v514_v49 = vpop.xlane.xlu2 %513  ;;  %589 = vadd.xlane.f32.xlu0 %v588_v45 }
 0x130   :  { %v539_v50 = vmul.f32 %v1202_v42, %v514_v49  ;;  %v591_v12 = vsel %vm243_vm0, %v563_v47, 0.0  ;;  %v1332_v49 = vperm.slane %v829_v28, 1 }
 0x131   :  { %v493_v52 = vpop.xlane.xlu1 %492  ;;  %592 = vadd.xlane.f32.xlu1 %v591_v12 }
 0x132   :  { %v1290_v53 = vsub.f32 %v1190_v24, %v539_v50  ;;  %v532_v18 = vmul.f32 %v1202_v42, %v493_v52  ;;  %v1303_v24 = vsub.f32 %v1180_v15, %v538_v55 }
 0x134   :  { %v1295_v36 = vsub.f32 %v1192_v27, %v532_v18  ;;  %v571_v58 = vmul.f32 %v1290_v53, %v1290_v53  ;;  %v570_v3 = vmul.f32 %v1303_v24, %v1303_v24 }
 0x136   :  { %v615_v59 = vsel %vm243_vm0, %v571_v58, 0.0  ;;  %v564_v60 = vmul.f32 %v1295_v36, %v1295_v36  ;;  %v612_v15 = vsel %vm243_vm0, %v570_v3, 0.0 }
 0x137   :  { %616 = vadd.xlane.f32.xlu0 %v615_v59  ;;  %v517_v61 = vpop.xlane.xlu0 %516 }
 0x138   :  { %v540_v40 = vmul.f32 %v1202_v42, %v517_v61  ;;  %v594_v0 = vsel %vm243_vm0, %v564_v60, 0.0 }
 0x139   :  { %595 = vadd.xlane.f32.xlu2 %v594_v0 }
 0x13a   :  { %v1308_v27 = vsub.f32 %v1198_v32, %v540_v40 }
 0x13c   :  { %v572_v1 = vmul.f32 %v1308_v27, %v1308_v27 }
 0x13e   :  { %v618_v5 = vsel %vm243_vm0, %v572_v1, 0.0 }
 0x13f   :  { %619 = vadd.xlane.f32.xlu1 %v618_v5 }
 0x141   :  { %613 = vadd.xlane.f32.xlu2 %v612_v15 }
 0x174   :  { %v575_v6 = vpop.xlane.xlu1 %574 }
 0x175   :  { %v621_v8 = vmul.f32 %v575_v6, %v1202_v42 }
 0x177   :  { %v637_v9 = vadd.f32 1e-05, %v621_v8 }
 0x179   :  { %946 = vrsqrt.f32 %v637_v9  ;;  %vm659_vm3 = vweird.f32 %v637_v9 }
 0x17a   :  { %v599_v10 = vpop.xlane.xlu0 %598 }
 0x17b   :  { %v629_v32 = vmul.f32 %v599_v10, %v1202_v42 }
 0x17c   :  { %v578_v48 = vpop.xlane.xlu2 %577 }
 0x17d   :  { %v645_v11 = vadd.f32 1e-05, %v629_v32  ;;  %v622_v13 = vmul.f32 %v578_v48, %v1202_v42 }
 0x17f   :  { %v947_v14 = vpop.eup %946  ;;  %948 = vrsqrt.f32 %v645_v11  ;;  %v638_v16 = vadd.f32 1e-05, %v622_v13  ;;  %vm739_vm6 = vweird.f32 %v645_v11 }
 0x180   :  { %v654_v19 = vmul.f32 %v947_v14, %v637_v9  ;;  %vm660_vm2 = vweird.f32 %v947_v14 }
 0x181   :  { %950 = vrsqrt.f32 %v638_v16  ;;  %vm661_vm4 = vmor %vm659_vm3, %vm660_vm2  ;;  %vm669_vm9 = vweird.f32 %v638_v16 }
 0x182   :  { %v655_v56 = vmul.f32 %v947_v14, %v654_v19 }
 0x184   :  { %v656_v21 = vmul.f32 0.5, %v655_v56  ;;  %v602_v22 = vpop.xlane.xlu1 %601  ;;  %v581_v23 = vpop.xlane.xlu0 %580 }
 0x185   :  { %v949_v25 = vpop.eup %948  ;;  %v630_v26 = vmul.f32 %v602_v22, %v1202_v42  ;;  %v623_v63 = vmul.f32 %v581_v23, %v1202_v42 }
 0x186   :  { %v657_v30 = vsub.f32 1.5, %v656_v21  ;;  %v734_v31 = vmul.f32 %v949_v25, %v645_v11  ;;  %vm740_vm5 = vweird.f32 %v949_v25 }
 0x187   :  { %v951_v33 = vpop.eup %950  ;;  %v1324_v34 = vadd.f32 1e-05, %v630_v26  ;;  %v1326_v35 = vadd.f32 1e-05, %v623_v63  ;;  %vm741_vm8 = vmor %vm739_vm6, %vm740_vm5 }
 0x188   :  { %v658_v37 = vmul.f32 %v947_v14, %v657_v30  ;;  %v735_v38 = vmul.f32 %v949_v25, %v734_v31  ;;  %v664_v4 = vmul.f32 %v951_v33, %v638_v16  ;;  %vm670_vm7 = vweird.f32 %v951_v33 }
 0x189   :  { %952 = vrsqrt.f32 %v1324_v34  ;;  %vm671_vm10 = vmor %vm669_vm9, %vm670_vm7  ;;  %vm749_vm13 = vweird.f32 %v1324_v34  ;;  %vm679_vm15 = vweird.f32 %v1326_v35 }
 0x18a   :  { %v662_v44 = vsel %vm661_vm4, %v947_v14, %v658_v37  ;;  %v736_v45 = vmul.f32 0.5, %v735_v38  ;;  %v665_v47 = vmul.f32 %v951_v33, %v664_v4  ;;  %954 = vrsqrt.f32 %v1326_v35 }
 0x18b   :  { %v813_v50 = vmul.f32 %v662_v44, %v1206_v46 }
 0x18c   :  { %v737_v12 = vsub.f32 1.5, %v736_v45  ;;  %v666_v52 = vmul.f32 0.5, %v665_v47  ;;  %v605_v18 = vpop.xlane.xlu2 %604 }
 0x18d   :  { %v831_v55 = vmul.f32 %v1328_v39, %v813_v50  ;;  %v631_v58 = vmul.f32 %v605_v18, %v1202_v42 }
 0x18e   :  { %v738_v59 = vmul.f32 %v949_v25, %v737_v12  ;;  %v667_v60 = vsub.f32 1.5, %v666_v52 }
 0x18f   :  { %v953_v61 = vpop.eup %952  ;;  %v848_v40 = vadd.f32 %v1332_v49, %v831_v55  ;;  %v1338_v0 = vadd.f32 1e-05, %v631_v58 }
 0x190   :  { %v955_v1 = vpop.eup %954  ;;  %v742_v46 = vsel %vm741_vm8, %v949_v25, %v738_v59  ;;  %v668_v3 = vmul.f32 %v951_v33, %v667_v60  ;;  %v744_v5 = vmul.f32 %v953_v61, %v1324_v34  ;;  %vm750_vm11 = vweird.f32 %v953_v61 }
 0x191   :  { %864 = vst.msk [vmem:[%s1522_s4] sm:$0xff] %vm243_vm0, %v848_v40  ;;  %v821_v15 = vmul.f32 %v742_v46, %v1213_v54  ;;  %v674_v6 = vmul.f32 %v955_v1, %v1326_v35  ;;  %956 = vrsqrt.f32 %v1338_v0  ;;  %vm680_vm12 = vweird.f32 %v955_v1  ;;  %vm751_vm14 = vmor %vm749_vm13, %vm750_vm11 }
 0x192   :  { %v672_v8 = vsel %vm671_vm10, %v951_v33, %v668_v3  ;;  %v745_v9 = vmul.f32 %v953_v61, %v744_v5  ;;  %v608_v10 = vpop.xlane.xlu0 %607  ;;  %vm681_vm1 = vmor %vm679_vm15, %vm680_vm12  ;;  %vm759_vm3 = vweird.f32 %v1338_v0 }
 0x193   :  { %v839_v32 = vmul.f32 %v1328_v39, %v821_v15  ;;  %v814_v48 = vmul.f32 %v672_v8, %v1217_v57  ;;  %v675_v11 = vmul.f32 %v955_v1, %v674_v6  ;;  %v632_v13 = vmul.f32 %v608_v10, %v1202_v42 }
 0x194   :  { %v746_v14 = vmul.f32 0.5, %v745_v9  ;;  %v584_v16 = vpop.xlane.xlu1 %583 }
 0x195   :  { %v856_v19 = vadd.f32 %v1332_v49, %v839_v32  ;;  %v832_v54 = vmul.f32 %v1328_v39, %v814_v48  ;;  %v676_v56 = vmul.f32 0.5, %v675_v11  ;;  %v1353_v21 = vadd.f32 1e-05, %v632_v13 }
 0x196   :  { %v747_v22 = vsub.f32 1.5, %v746_v14  ;;  %v624_v23 = vmul.f32 %v584_v16, %v1202_v42 }
 0x197   :  { %v957_v25 = vpop.eup %956  ;;  %872 = vst.msk [vmem:[%s1522_s4 + $0x40] sm:$0xff] %vm243_vm0, %v856_v19  ;;  %v849_v57 = vadd.f32 %v1332_v49, %v832_v54  ;;  %v677_v26 = vsub.f32 1.5, %v676_v56  ;;  %958 = vrsqrt.f32 %v1353_v21  ;;  %vm769_vm6 = vweird.f32 %v1353_v21 }
 0x198   :  { %v748_v63 = vmul.f32 %v953_v61, %v747_v22  ;;  %v754_v28 = vmul.f32 %v957_v25, %v1338_v0  ;;  %v1364_v30 = vadd.f32 1e-05, %v624_v23  ;;  %vm760_vm2 = vweird.f32 %v957_v25 }
 0x199   :  { %865 = vst.msk [vmem:[%s1522_s4 + $0x8] sm:$0xff] %vm243_vm0, %v849_v57  ;;  %v678_v31 = vmul.f32 %v955_v1, %v677_v26  ;;  %vm761_vm4 = vmor %vm759_vm3, %vm760_vm2 }
 0x19a   :  { %v752_v33 = vsel %vm751_vm14, %v953_v61, %v748_v63  ;;  %v755_v37 = vmul.f32 %v957_v25, %v754_v28  ;;  %960 = vrsqrt.f32 %v1364_v30  ;;  %v587_v38 = vpop.xlane.xlu2 %586  ;;  %vm689_vm9 = vweird.f32 %v1364_v30 }
 0x19b   :  { %v822_v34 = vmul.f32 %v752_v33, %v1231_v2  ;;  %v682_v4 = vsel %vm681_vm1, %v955_v1, %v678_v31  ;;  %v625_v44 = vmul.f32 %v587_v38, %v1202_v42 }
 0x19c   :  { %v815_v45 = vmul.f32 %v682_v4, %v1228_v43  ;;  %v756_v47 = vmul.f32 0.5, %v755_v37  ;;  %v611_v50 = vpop.xlane.xlu1 %610 }
 0x19d   :  { %v959_v12 = vpop.eup %958  ;;  %v840_v52 = vmul.f32 %v1328_v39, %v822_v34  ;;  %v1376_v18 = vadd.f32 1e-05, %v625_v44  ;;  %v633_v35 = vmul.f32 %v611_v50, %v1202_v42 }
 0x19e   :  { %v833_v55 = vmul.f32 %v1328_v39, %v815_v45  ;;  %v757_v58 = vsub.f32 1.5, %v756_v47  ;;  %v764_v2 = vmul.f32 %v959_v12, %v1353_v21  ;;  %vm770_vm5 = vweird.f32 %v959_v12 }
 0x19f   :  { %v857_v59 = vadd.f32 %v1332_v49, %v840_v52  ;;  %962 = vrsqrt.f32 %v1376_v18  ;;  %v1383_v43 = vadd.f32 1e-05, %v633_v35  ;;  %vm771_vm7 = vmor %vm769_vm6, %vm770_vm5  ;;  %vm699_vm12 = vweird.f32 %v1376_v18 }
 0x1a0   :  { %v961_v60 = vpop.eup %960  ;;  %v850_v61 = vadd.f32 %v1332_v49, %v833_v55  ;;  %v758_v40 = vmul.f32 %v957_v25, %v757_v58  ;;  %v765_v1 = vmul.f32 %v959_v12, %v764_v2 }
 0x1a1   :  { %873 = vst.msk [vmem:[%s1522_s4 + $0x48] sm:$0xff] %vm243_vm0, %v857_v59  ;;  %v684_v46 = vmul.f32 %v961_v60, %v1364_v30  ;;  %964 = vrsqrt.f32 %v1383_v43  ;;  %vm690_vm8 = vweird.f32 %v961_v60  ;;  %vm779_vm15 = vweird.f32 %v1383_v43 }
 0x1a2   :  { %866 = vst.msk [vmem:[%s1522_s4 + $0x10] sm:$0xff] %vm243_vm0, %v850_v61  ;;  %v762_v3 = vsel %vm761_vm4, %v957_v25, %v758_v40  ;;  %v766_v5 = vmul.f32 0.5, %v765_v1  ;;  %v590_v15 = vpop.xlane.xlu0 %589  ;;  %vm691_vm10 = vmor %vm689_vm9, %vm690_vm8 }
 0x1a3   :  { %v823_v0 = vmul.f32 %v762_v3, %v1241_v51  ;;  %v685_v6 = vmul.f32 %v961_v60, %v684_v46  ;;  %v626_v8 = vmul.f32 %v590_v15, %v1202_v42 }
 0x1a4   :  { %v767_v9 = vsub.f32 1.5, %v766_v5  ;;  %v593_v10 = vpop.xlane.xlu1 %592 }
 0x1a5   :  { %v963_v32 = vpop.eup %962  ;;  %v841_v48 = vmul.f32 %v1328_v39, %v823_v0  ;;  %v686_v11 = vmul.f32 0.5, %v685_v6  ;;  %v1400_v13 = vadd.f32 1e-05, %v626_v8  ;;  %v627_v14 = vmul.f32 %v593_v10, %v1202_v42 }
 0x1a6   :  { %v768_v16 = vmul.f32 %v959_v12, %v767_v9  ;;  %v694_v19 = vmul.f32 %v963_v32, %v1376_v18  ;;  %vm700_vm11 = vweird.f32 %v963_v32 }
 0x1a7   :  { %v965_v51 = vpop.eup %964  ;;  %v858_v54 = vadd.f32 %v1332_v49, %v841_v48  ;;  %v687_v56 = vsub.f32 1.5, %v686_v11  ;;  %966 = vrsqrt.f32 %v1400_v13  ;;  %v1414_v26 = vadd.f32 1e-05, %v627_v14  ;;  %vm701_vm14 = vmor %vm699_vm12, %vm700_vm11 }
 0x1a8   :  { %v772_v22 = vsel %vm771_vm7, %v959_v12, %v768_v16  ;;  %v695_v23 = vmul.f32 %v963_v32, %v694_v19  ;;  %v774_v25 = vmul.f32 %v965_v51, %v1383_v43  ;;  %vm780_vm13 = vweird.f32 %v965_v51 }
 0x1a9   :  { %874 = vst.msk [vmem:[%s1522_s4 + $0x50] sm:$0xff] %vm243_vm0, %v858_v54  ;;  %v824_v21 = vmul.f32 %v772_v22, %v1248_v17  ;;  %v688_v57 = vmul.f32 %v961_v60, %v687_v56  ;;  %968 = vrsqrt.f32 %v1414_v26  ;;  %vm781_vm1 = vmor %vm779_vm15, %vm780_vm13  ;;  %vm709_vm3 = vweird.f32 %v1400_v13 }
 0x1aa   :  { %v696_v63 = vmul.f32 0.5, %v695_v23  ;;  %v775_v28 = vmul.f32 %v965_v51, %v774_v25  ;;  %v617_v31 = vpop.xlane.xlu0 %616  ;;  %vm719_vm6 = vweird.f32 %v1414_v26 }
 0x1ab   :  { %v842_v33 = vmul.f32 %v1328_v39, %v824_v21  ;;  %v692_v37 = vsel %vm691_vm10, %v961_v60, %v688_v57  ;;  %v635_v17 = vmul.f32 %v617_v31, %v1202_v42 }
 0x1ac   :  { %v816_v38 = vmul.f32 %v692_v37, %v1252_v20  ;;  %v697_v34 = vsub.f32 1.5, %v696_v63  ;;  %v776_v4 = vmul.f32 0.5, %v775_v28  ;;  %v596_v44 = vpop.xlane.xlu2 %595 }
 0x1ad   :  { %v967_v30 = vpop.eup %966  ;;  %v859_v45 = vadd.f32 %v1332_v49, %v842_v33  ;;  %v628_v47 = vmul.f32 %v596_v44, %v1202_v42  ;;  %v1431_v20 = vadd.f32 1e-05, %v635_v17 }
 0x1ae   :  { %v834_v50 = vmul.f32 %v1328_v39, %v816_v38  ;;  %v698_v12 = vmul.f32 %v963_v32, %v697_v34  ;;  %v777_v52 = vsub.f32 1.5, %v776_v4  ;;  %v704_v35 = vmul.f32 %v967_v30, %v1400_v13 }
 0x1af   :  { %875 = vst.msk [vmem:[%s1522_s4 + $0x58] sm:$0xff] %vm243_vm0, %v859_v45  ;;  %v1433_v18 = vadd.f32 1e-05, %v628_v47  ;;  %v969_v60 = vpop.eup %968  ;;  %970 = vrsqrt.f32 %v1431_v20  ;;  %vm710_vm2 = vweird.f32 %v967_v30  ;;  %vm799_vm9 = vweird.f32 %v1431_v20 }
 0x1b0   :  { %v851_v55 = vadd.f32 %v1332_v49, %v834_v50  ;;  %v702_v58 = vsel %vm701_vm14, %v963_v32, %v698_v12  ;;  %v778_v2 = vmul.f32 %v965_v51, %v777_v52  ;;  %v705_v59 = vmul.f32 %v967_v30, %v704_v35  ;;  %vm711_vm4 = vmor %vm709_vm3, %vm710_vm2 }
 0x1b1   :  { %v817_v61 = vmul.f32 %v702_v58, %v1263_v62  ;;  %v714_v1 = vmul.f32 %v969_v60, %v1414_v26  ;;  %972 = vrsqrt.f32 %v1433_v18  ;;  %vm720_vm5 = vweird.f32 %v969_v60 }
 0x1b2   :  { %867 = vst.msk [vmem:[%s1522_s4 + $0x18] sm:$0xff] %vm243_vm0, %v851_v55  ;;  %v782_v43 = vsel %vm781_vm1, %v965_v51, %v778_v2  ;;  %v706_v40 = vmul.f32 0.5, %v705_v59  ;;  %v620_v46 = vpop.xlane.xlu1 %619  ;;  %vm721_vm7 = vmor %vm719_vm6, %vm720_vm5  ;;  %vm729_vm12 = vweird.f32 %v1433_v18 }
 0x1b3   :  { %v835_v3 = vmul.f32 %v1328_v39, %v817_v61  ;;  %v825_v5 = vmul.f32 %v782_v43, %v1266_v29  ;;  %v636_v62 = vmul.f32 %v620_v46, %v1202_v42  ;;  %v715_v0 = vmul.f32 %v969_v60, %v714_v1 }
 0x1b4   :  { %v707_v15 = vsub.f32 1.5, %v706_v40  ;;  %v614_v6 = vpop.xlane.xlu2 %613 }
 0x1b5   :  { %v852_v8 = vadd.f32 %v1332_v49, %v835_v3  ;;  %v843_v9 = vmul.f32 %v1328_v39, %v825_v5  ;;  %v1450_v10 = vadd.f32 1e-05, %v636_v62  ;;  %v634_v32 = vmul.f32 %v614_v6, %v1202_v42  ;;  %v971_v11 = vpop.eup %970 }
 0x1b6   :  { %v708_v48 = vmul.f32 %v967_v30, %v707_v15  ;;  %v716_v29 = vmul.f32 0.5, %v715_v0  ;;  %v794_v42 = vmul.f32 %v971_v11, %v1431_v20  ;;  %vm800_vm8 = vweird.f32 %v971_v11 }
 0x1b7   :  { %868 = vst.msk [vmem:[%s1522_s4 + $0x20] sm:$0xff] %vm243_vm0, %v852_v8  ;;  %v860_v14 = vadd.f32 %v1332_v49, %v843_v9  ;;  %974 = vrsqrt.f32 %v1450_v10  ;;  %v1460_v16 = vadd.f32 1e-05, %v634_v32  ;;  %v973_v13 = vpop.eup %972  ;;  %vm801_vm11 = vmor %vm799_vm9, %vm800_vm8  ;;  %vm809_vm15 = vweird.f32 %v1450_v10 }
 0x1b8   :  { %v712_v19 = vsel %vm711_vm4, %v967_v30, %v708_v48  ;;  %v717_v51 = vsub.f32 1.5, %v716_v29  ;;  %v795_v22 = vmul.f32 %v971_v11, %v794_v42  ;;  %v724_v23 = vmul.f32 %v973_v13, %v1433_v18 }
 0x1b9   :  { %876 = vst.msk [vmem:[%s1522_s4 + $0x60] sm:$0xff] %vm243_vm0, %v860_v14  ;;  %v818_v54 = vmul.f32 %v712_v19, %v1276_v7  ;;  %976 = vrsqrt.f32 %v1460_v16  ;;  %vm730_vm10 = vweird.f32 %v973_v13  ;;  %vm789_vm3 = vweird.f32 %v1460_v16 }
 0x1ba   :  { %v718_v56 = vmul.f32 %v969_v60, %v717_v51  ;;  %v796_v57 = vmul.f32 0.5, %v795_v22  ;;  %v725_v63 = vmul.f32 %v973_v13, %v724_v23  ;;  %vm731_vm13 = vmor %vm729_vm12, %vm730_vm10 }
 0x1bb   :  { %v836_v25 = vmul.f32 %v1328_v39, %v818_v54 }
 0x1bc   :  { %v722_v21 = vsel %vm721_vm7, %v969_v60, %v718_v56  ;;  %v797_v7 = vsub.f32 1.5, %v796_v57  ;;  %v726_v37 = vmul.f32 0.5, %v725_v63 }
 0x1bd   :  { %v975_v28 = vpop.eup %974  ;;  %v853_v31 = vadd.f32 %v1332_v49, %v836_v25  ;;  %v819_v33 = vmul.f32 %v722_v21, %v1280_v41 }
 0x1be   :  { %v804_v38 = vmul.f32 %v975_v28, %v1450_v10  ;;  %v798_v4 = vmul.f32 %v971_v11, %v797_v7  ;;  %v727_v17 = vsub.f32 1.5, %v726_v37  ;;  %vm810_vm14 = vweird.f32 %v975_v28 }
 0x1bf   :  { %v977_v26 = vpop.eup %976  ;;  %869 = vst.msk [vmem:[%s1522_s4 + $0x28] sm:$0xff] %vm243_vm0, %v853_v31  ;;  %v837_v34 = vmul.f32 %v1328_v39, %v819_v33  ;;  %vm811_vm2 = vmor %vm809_vm15, %vm810_vm14 }
 0x1c0   :  { %v805_v44 = vmul.f32 %v975_v28, %v804_v38  ;;  %v784_v41 = vmul.f32 %v977_v26, %v1460_v16  ;;  %v802_v45 = vsel %vm801_vm11, %v971_v11, %v798_v4  ;;  %v728_v47 = vmul.f32 %v973_v13, %v727_v17 }
 0x1c1   :  { %v854_v30 = vadd.f32 %v1332_v49, %v837_v34  ;;  %v827_v52 = vmul.f32 %v802_v45, %v1290_v53  ;;  %vm790_vm1 = vweird.f32 %v977_v26 }
 0x1c2   :  { %v806_v50 = vmul.f32 0.5, %v805_v44  ;;  %v785_v12 = vmul.f32 %v977_v26, %v784_v41  ;;  %v732_v35 = vsel %vm731_vm13, %v973_v13, %v728_v47  ;;  %vm791_vm4 = vmor %vm789_vm3, %vm790_vm1 }
 0x1c3   :  { %870 = vst.msk [vmem:[%s1522_s4 + $0x30] sm:$0xff] %vm243_vm0, %v854_v30  ;;  %v845_v58 = vmul.f32 %v1328_v39, %v827_v52  ;;  %v820_v18 = vmul.f32 %v732_v35, %v1295_v36 }
 0x1c4   :  { %v807_v20 = vsub.f32 1.5, %v806_v50  ;;  %v786_v55 = vmul.f32 0.5, %v785_v12 }
 0x1c5   :  { %v862_v60 = vadd.f32 %v1332_v49, %v845_v58  ;;  %v838_v61 = vmul.f32 %v1328_v39, %v820_v18 }
 0x1c6   :  { %v808_v2 = vmul.f32 %v975_v28, %v807_v20  ;;  %v787_v59 = vsub.f32 1.5, %v786_v55 }
 0x1c7   :  { %878 = vst.msk [vmem:[%s1522_s4 + $0x70] sm:$0xff] %vm243_vm0, %v862_v60  ;;  %v855_v36 = vadd.f32 %v1332_v49, %v838_v61 }
 0x1c8   :  { %v812_v53 = vsel %vm811_vm2, %v975_v28, %v808_v2  ;;  %v788_v43 = vmul.f32 %v977_v26, %v787_v59 }
 0x1c9   :  { %v828_v40 = vmul.f32 %v812_v53, %v1308_v27  ;;  %871 = vst.msk [vmem:[%s1522_s4 + $0x38] sm:$0xff] %vm243_vm0, %v855_v36 }
 0x1ca   :  { %v792_v1 = vsel %vm791_vm4, %v977_v26, %v788_v43 }
 0x1cb   :  { %v846_v46 = vmul.f32 %v1328_v39, %v828_v40  ;;  %v826_v3 = vmul.f32 %v792_v1, %v1303_v24 }
 0x1cd   :  { %v863_v5 = vadd.f32 %v1332_v49, %v846_v46  ;;  %v844_v62 = vmul.f32 %v1328_v39, %v826_v3 }
 0x1cf   :  { %879 = vst.msk [vmem:[%s1522_s4 + $0x78] sm:$0xff] %vm243_vm0, %v863_v5  ;;  %v861_v27 = vadd.f32 %v1332_v49, %v844_v62 }
 0x1d1   :  { %877 = vst.msk [vmem:[%s1522_s4 + $0x68] sm:$0xff] %vm243_vm0, %v861_v27 }

</bundles_post_ra>
